<compile_context>
chip_gen: v5e
topology: v5e:2x2
jax: 0.10.0
libtpu: 0.0.40
codegen_flags: <defaults>
</compile_context>

<pallas_src>
import numpy as np
import jax
import jax.numpy as jnp
from jax.experimental import pallas as pl
from jax.experimental.pallas import tpu as pltpu


def _seq3_kernel(w_ref, p_ref, b_ref, o_ref):
    # w_ref : (S*Cout, S*Kp)  block-diagonal im2col-flattened weights
    # p_ref : (S*Kp, TM)      stacked per-split im2col patches (lane dim = M tile)
    # b_ref : (S*Cout, 1)     stacked per-split bias
    # o_ref : (S*Cout, TM)    lane-dense output (rows = split-major Cout)
    acc = jnp.dot(w_ref[...], p_ref[...], preferred_element_type=jnp.float32)
    o_ref[...] = (acc + b_ref[...]).astype(o_ref.dtype)


def _round_up(x, m):
    return ((x + m - 1) // m) * m


def seq3_forward(x_nchw, weights, biases, *, split_factor, stride=1, padding=1):
    """weights: [S, KH, KW, Cin, Cout], biases: [S, 1, Cout]. Returns NCHW."""
    N, Cin, H, W = x_nchw.shape
    S = split_factor
    assert H % S == 0, "H must be divisible by split_factor (rows would be dropped)"
    Hg = H // S
    KH, KW = weights.shape[1], weights.shape[2]
    Cout = weights.shape[-1]
    Hout = (Hg + 2 * padding - KH) // stride + 1
    Wout = (W + 2 * padding - KW) // stride + 1
    K = KH * KW * Cin
    M = N * Hout * Wout

    # --- padded / tiled extents ----------------------------------------------
    LANE, SUBLANE, TM_CAP = 128, 8, 2048
    Kp = _round_up(K, SUBLANE)                     # sublane-aligned reduction dim
    if M <= TM_CAP:
        Mp = _round_up(M, LANE)
        TM = Mp                                    # single grid step
    else:
        TM = TM_CAP
        Mp = _round_up(M, TM)
    grid_m = Mp // TM
    dt = x_nchw.dtype

    # --- wrapper glue: NCHW -> per-split padded (S, Cin, N, Hg, W) ------------
    x5 = x_nchw.reshape(N, Cin, S, Hg, W)
    x5 = jnp.transpose(x5, (2, 1, 0, 3, 4))                     # (S,Cin,N,Hg,W)
    # each conv zero-pads its own chunk independently
    x_pad = jnp.pad(x5, ((0, 0), (0, 0), (0, 0),
                         (padding, padding), (padding, padding)))

    # --- im2col: (S, K, M); K ordered (kh, kw, cin), M ordered (n, ho, wo) ----
    cols = []
    for kh in range(KH):
        for kw in range(KW):
            cols.append(
                x_pad[:, :, :, kh: kh + (Hout - 1) * stride + 1: stride,
                      kw: kw + (Wout - 1) * stride + 1: stride])
    p = jnp.stack(cols, axis=1)                  # (S, KH*KW, Cin, N, Hout, Wout)
    p = p.reshape(S, K, M)
    p = jnp.pad(p, ((0, 0), (0, Kp - K), (0, Mp - M)))          # zero-fill pads
    p = p.reshape(S * Kp, Mp)                                   # stacked patches

    # --- weights -> block-diagonal (S*Cout, S*Kp); bias -> (S*Cout, 1) --------
    w_t = jnp.transpose(weights, (0, 4, 1, 2, 3)).reshape(S, Cout, K)
    w_t = jnp.pad(w_t, ((0, 0), (0, 0), (0, Kp - K)))           # (S, Cout, Kp)
    w_bd = jnp.einsum('st,sck->sctk', jnp.eye(S, dtype=dt), w_t)
    w_bd = w_bd.reshape(S * Cout, S * Kp)
    b_t = biases.reshape(S * Cout, 1).astype(dt)

    itemsize = jnp.dtype(dt).itemsize
    cost = pl.CostEstimate(
        flops=2 * (S * Cout) * (S * Kp) * Mp,
        transcendentals=0,
        bytes_accessed=(p.size + w_bd.size + b_t.size + (S * Cout) * Mp) * itemsize)

    out = pl.pallas_call(
        _seq3_kernel,
        out_shape=jax.ShapeDtypeStruct((S * Cout, Mp), dt),
        grid_spec=pltpu.PrefetchScalarGridSpec(
            num_scalar_prefetch=0,
            grid=(grid_m,),
            in_specs=[
                pl.BlockSpec((S * Cout, S * Kp), lambda m: (0, 0)),   # weights
                pl.BlockSpec((S * Kp, TM), lambda m: (0, m)),         # patches
                pl.BlockSpec((S * Cout, 1), lambda m: (0, 0)),        # bias
            ],
            out_specs=pl.BlockSpec((S * Cout, TM), lambda m: (0, m)),
        ),
        compiler_params=pltpu.CompilerParams(
            dimension_semantics=("parallel",),
            vmem_limit_bytes=32 * 1024 * 1024),
        cost_estimate=cost,
    )(w_bd, p, b_t)                                # (S*Cout, Mp)

    # --- glue: (S*Cout, Mp) -> NCHW with splits concatenated along H ----------
    out = out[:, :M].reshape(S, Cout, N, Hout, Wout)
    out = jnp.transpose(out, (2, 1, 0, 3, 4)).reshape(N, Cout, S * Hout, Wout)
    return out


def _reference_seq3(x_nchw, weights, biases, *, split_factor, stride, padding):
    """Pure-JAX (lax.conv) reference for correctness check."""
    N, Cin, H, W = x_nchw.shape
    Hg = H // split_factor
    outs = []
    for i in range(split_factor):
        xi = x_nchw[:, :, i * Hg:(i + 1) * Hg, :]
        w_oihw = jnp.transpose(weights[i], (3, 2, 0, 1))
        o = jax.lax.conv_general_dilated(
            xi, w_oihw, window_strides=(stride, stride),
            padding=((padding, padding), (padding, padding)),
            dimension_numbers=("NCHW", "OIHW", "NCHW"))
        o = o + biases[i].reshape(1, -1, 1, 1)
        outs.append(o)
    return jnp.concatenate(outs, axis=2)


if __name__ == "__main__":
    # Module config (small, consistent with Seq3.__init__)
    in_channels, out_channels = 4, 8
    kernel_size, padding = 3, 1
    split_factor = 2
    N, H, W = 2, 16, 16

    key = jax.random.PRNGKey(0)
    kx, kw, kb = jax.random.split(key, 3)

    x = jax.random.normal(kx, (N, in_channels, H, W), dtype=jnp.float32)

    # Deterministic PyTorch-style uniform(-1/sqrt(fan_in)) init, one conv per split.
    fan_in = in_channels * kernel_size * kernel_size
    bound = 1.0 / np.sqrt(fan_in)
    weights = jax.random.uniform(
        kw, (split_factor, kernel_size, kernel_size, in_channels, out_channels),
        minval=-bound, maxval=bound, dtype=jnp.float32)
    biases = jax.random.uniform(
        kb, (split_factor, 1, out_channels),
        minval=-bound, maxval=bound, dtype=jnp.float32)

    # stride=1 (primary config) and stride=2 coverage
    for stride in (1, 2):
        out = seq3_forward(x, weights, biases,
                           split_factor=split_factor, stride=stride, padding=padding)
        out = jax.block_until_ready(out)
        ref = _reference_seq3(x, weights, biases,
                              split_factor=split_factor, stride=stride, padding=padding)
        ref = jax.block_until_ready(ref)
        assert out.shape == ref.shape, (out.shape, ref.shape)
        assert np.allclose(np.asarray(out), np.asarray(ref), atol=1e-4, rtol=1e-4), \
            f"mismatch at stride={stride}"

    print("KERNEL_OK")
</pallas_src>

<mosaic_0001>
module attributes {stable_mosaic.version = 11 : i64} {
  func.func @_seq3_kernel(%arg0: i32, %arg1: memref<16x80xf32, #tpu.memory_space<vmem>>, %arg2: memref<80x256xf32, #tpu.memory_space<vmem>>, %arg3: memref<16x1xf32, #tpu.memory_space<vmem>>, %arg4: memref<16x256xf32, #tpu.memory_space<vmem>>) attributes {dimension_semantics = [#tpu.dimension_semantics<parallel>], iteration_bounds = array<i64: 1>, scalar_prefetch = 0 : i64, scratch_operands = 0 : i64, tpu.core_type = #tpu.core_type<tc>, window_params = [{pipeline_mode = #tpu.pipeline_mode<synchronous>, transform_indices = @transform_0, window_bounds = array<i64: 16, 80>}, {transform_indices = @transform_1, window_bounds = array<i64: 80, 256>}, {pipeline_mode = #tpu.pipeline_mode<synchronous>, transform_indices = @transform_2, window_bounds = array<i64: 16, 1>}, {transform_indices = @transform_3, window_bounds = array<i64: 16, 256>}]} {
    %c0 = arith.constant 0 : index
    %c0_0 = arith.constant 0 : index
    %0 = vector.load %arg1[%c0, %c0_0] : memref<16x80xf32, #tpu.memory_space<vmem>>, vector<16x80xf32>
    %c0_1 = arith.constant 0 : index
    %c0_2 = arith.constant 0 : index
    %1 = vector.load %arg2[%c0_1, %c0_2] : memref<80x256xf32, #tpu.memory_space<vmem>>, vector<80x256xf32>
    %cst = arith.constant dense<0.000000e+00> : vector<16x256xf32>
    %2 = tpu.matmul %0, %1, %cst {dimension_numbers = #tpu.dot_dimension_numbers<[1], [0], [0], [1], [0, 0, 1, 1], [], []>} : vector<16x80xf32>, vector<80x256xf32>, vector<16x256xf32> -> vector<16x256xf32>
    %c0_3 = arith.constant 0 : index
    %c0_4 = arith.constant 0 : index
    %3 = vector.load %arg3[%c0_3, %c0_4] : memref<16x1xf32, #tpu.memory_space<vmem>>, vector<16x1xf32>
    %4 = vector.broadcast %3 : vector<16x1xf32> to vector<16x256xf32>
    %5 = arith.addf %2, %4 : vector<16x256xf32>
    %c0_5 = arith.constant 0 : index
    %c0_6 = arith.constant 0 : index
    %6 = vector.load %arg4[%c0_5, %c0_6] : memref<16x256xf32, #tpu.memory_space<vmem>>, vector<16x256xf32>
    tpu.vector_store %arg4[%c0_5, %c0_6], %5 {strides = array<i32>} : memref<16x256xf32, #tpu.memory_space<vmem>>, vector<16x256xf32>,
    return
  }
  func.func @transform_0(%arg0: i32) -> (i32, i32) {
    %c0_i32 = arith.constant 0 : i32
    %c0_i32_0 = arith.constant 0 : i32
    %c0_i32_1 = arith.constant 0 : i32
    return %c0_i32, %c0_i32_0 : i32, i32
  }
  func.func @transform_1(%arg0: i32) -> (i32, i32) {
    %c0_i32 = arith.constant 0 : i32
    %c0_i32_0 = arith.constant 0 : i32
    return %c0_i32, %arg0 : i32, i32
  }
  func.func @transform_2(%arg0: i32) -> (i32, i32) {
    %c0_i32 = arith.constant 0 : i32
    %c0_i32_0 = arith.constant 0 : i32
    %c0_i32_1 = arith.constant 0 : i32
    return %c0_i32, %c0_i32_0 : i32, i32
  }
  func.func @transform_3(%arg0: i32) -> (i32, i32) {
    %c0_i32 = arith.constant 0 : i32
    %c0_i32_0 = arith.constant 0 : i32
    return %c0_i32, %arg0 : i32, i32
  }
}

</mosaic_0001>

<bundles_post_ra>
// kernel: tpu_custom_call.1
= control target key start
LH: loop header
LB: loop body
LE: loop exit
PB: predicated region body
PF: predicated region fallthrough
CT: control target
= control target key end

     0   :  { %8 = vsyncpa [#allocation3], 0  ;;  %s272_s0 = inlined_call_operand.vmem [shape: f32[16,80], index: 0, kind: input, shape index: {}]   ;;  %s273_s1 = inlined_call_operand.hbm [shape: f32[80,256], index: 1, kind: input, shape index: {}]   ;;  %s274_s2 = inlined_call_operand.vmem [shape: f32[16,1], index: 2, kind: input, shape index: {}]   ;;  %s275_s3 = inlined_call_operand.hbm [shape: f32[16,256], index: 3, kind: output, shape index: {}]  }
   0x1   :  { %9 = vsyncpa [#allocation4], 0  ;;  %s16_s14 = sshll.u32 %s273_s1, 4  ;;  %s223_s15 = smov [#allocation2]   ;;  %s17_s14 = int_to_ptr.hbm [resolvable:$true] %s16_s14 }
   0x2   :  { %s18_s16 = sshll.u32 %s223_s15, 4  ;;  %s224_s17 = smov 256   ;;  %s19_s16 = int_to_ptr.vmem [resolvable:$true] %s18_s16 }
   0x3   :  { %s225_s18 = smov 16  }
   0x4   :  { %24 = dma.hbm_to_vmem [thread:$0]  %s17_s14, 2560, %s19_s16, [#allocation3], %s224_s17, %s224_s17, %s225_s18  }
   0x5   :  { %219 = dma.done.wait [#allocation3], 2560  }
   0x6   :  { %220 = vsyncadd [#allocation3], 4294964736  ;;  %v226_v0 = vmov 0   ;;  %v51_v1 = vld [vmem:[#allocation2 + $0x90] sm:$0xff]  ;;  %v52_v2 = vld [vmem:[#allocation2 + $0x98] sm:$0xff]  ;;  %vm65_vm0 = vcmask 654336  }
   0x7   :  { %170 = vset.pattern.permute.xlu0 %v226_v0  ;;  %v49_v3 = vld [vmem:[#allocation2 + $0x80] sm:$0xff]  ;;  %78 = vmatpush.msra.mxu0 %v51_v1  ;;  %v50_v4 = vld [vmem:[#allocation2 + $0x88] sm:$0xff]  ;;  %v47_v5 = vld [vmem:[#allocation2 + $0x70] sm:$0xff]  ;;  %s128_s29 = sshll.u32 %s275_s3, 4  ;;  %s129_s29 = int_to_ptr.hbm [resolvable:$true] %s128_s29 }
   0x8   :  { %145 = vmatpush.msra.mxu2 %v51_v1  ;;  %101 = vmatpush.msra.mxu1 %v52_v2  ;;  %v48_v6 = vld [vmem:[#allocation2 + $0x78] sm:$0xff]  ;;  %v45_v7 = vld [vmem:[#allocation2 + $0x60] sm:$0xff]  ;;  %v46_v8 = vld [vmem:[#allocation2 + $0x68] sm:$0xff] }
   0x9   :  { %155 = vmatpush.msra.mxu3 %v52_v2  ;;  %79 = vmatpush.msra.mxu0 %v49_v3  ;;  %v43_v9 = vld [vmem:[#allocation2 + $0x50] sm:$0xff]  ;;  %v44_v10 = vld [vmem:[#allocation2 + $0x58] sm:$0xff]  ;;  %v41_v11 = vld [vmem:[#allocation2 + $0x40] sm:$0xff] }
   0xa   :  { %146 = vmatpush.msra.mxu2 %v49_v3  ;;  %102 = vmatpush.msra.mxu1 %v50_v4  ;;  %v42_v12 = vld [vmem:[#allocation2 + $0x48] sm:$0xff]  ;;  %v39_v13 = vld [vmem:[#allocation2 + $0x30] sm:$0xff]  ;;  %v40_v14 = vld [vmem:[#allocation2 + $0x38] sm:$0xff] }
   0xb   :  { %156 = vmatpush.msra.mxu3 %v50_v4  ;;  %80 = vmatpush.msra.mxu0 %v47_v5  ;;  %v37_v15 = vld [vmem:[#allocation2 + $0x20] sm:$0xff]  ;;  %v38_v16 = vld [vmem:[#allocation2 + $0x28] sm:$0xff]  ;;  %v35_v17 = vld [vmem:[#allocation2 + $0x10] sm:$0xff] }
   0xc   :  { %147 = vmatpush.msra.mxu2 %v47_v5  ;;  %103 = vmatpush.msra.mxu1 %v48_v6  ;;  %v36_v18 = vld [vmem:[#allocation2 + $0x18] sm:$0xff]  ;;  %v33_v19 = vld [vmem:[#allocation2] sm:$0xff]  ;;  %v34_v20 = vld [vmem:[#allocation2 + $0x8] sm:$0xff] }
   0xd   :  { %157 = vmatpush.msra.mxu3 %v48_v6  ;;  %81 = vmatpush.msra.mxu0 %v45_v7  ;;  %v31_v21 = vld [vmem:[%s272_s0] sm:$0xff]  ;;  %v32_v22 = vld [vmem:[%s272_s0 + $0x8] sm:$0xff]  ;;  %s227_s0 = smov [#allocation5]  }
   0xe   :  { %148 = vmatpush.msra.mxu2 %v45_v7  ;;  %104 = vmatpush.msra.mxu1 %v46_v8  ;;  %v53_v23 = vld [vmem:[%s274_s2] sm:$0xff]  ;;  %v54_v24 = vld [vmem:[%s274_s2 + $0x8] sm:$0xff]  ;;  %s126_s26 = sshll.u32 %s227_s0, 4  ;;  %s127_s26 = int_to_ptr.vmem [resolvable:$true] %s126_s26 }
   0xf   :  { %158 = vmatpush.msra.mxu3 %v46_v8  ;;  %82 = vmatpush.msra.mxu0 %v43_v9 }
  0x10   :  { %149 = vmatpush.msra.mxu2 %v43_v9  ;;  %105 = vmatpush.msra.mxu1 %v44_v10 }
  0x11   :  { %159 = vmatpush.msra.mxu3 %v44_v10  ;;  %83 = vmatpush.msra.mxu0 %v41_v11 }
  0x12   :  { %150 = vmatpush.msra.mxu2 %v41_v11  ;;  %106 = vmatpush.msra.mxu1 %v42_v12 }
  0x13   :  { %160 = vmatpush.msra.mxu3 %v42_v12  ;;  %84 = vmatpush.msra.mxu0 %v39_v13 }
  0x14   :  { %151 = vmatpush.msra.mxu2 %v39_v13  ;;  %107 = vmatpush.msra.mxu1 %v40_v14 }
  0x15   :  { %161 = vmatpush.msra.mxu3 %v40_v14  ;;  %85 = vmatpush.msra.mxu0 %v37_v15 }
  0x16   :  { %152 = vmatpush.msra.mxu2 %v37_v15  ;;  %108 = vmatpush.msra.mxu1 %v38_v16 }
  0x17   :  { %162 = vmatpush.msra.mxu3 %v38_v16  ;;  %86 = vmatpush.msra.mxu0 %v35_v17 }
  0x18   :  { %153 = vmatpush.msra.mxu2 %v35_v17  ;;  %109 = vmatpush.msra.mxu1 %v36_v18 }
  0x19   :  { %163 = vmatpush.msra.mxu3 %v36_v18  ;;  %87 = vmatpush.msra.mxu0 %v33_v19 }
  0x1a   :  { %154 = vmatpush.msra.mxu2 %v33_v19  ;;  %110 = vmatpush.msra.mxu1 %v34_v20 }
  0x1b   :  { %164 = vmatpush.msra.mxu3 %v34_v20  ;;  %141 = vmatmul.msk.f32.vlgmr.msra.gmra.mxu0 %vm65_vm0, %v31_v21 }
  0x1c   :  { %142 = vmatmul.msk.f32.vlgmr.msra.gmra.mxu2 %vm65_vm0, %v32_v22  ;;  %143 = vmatmul.msk.f32.vlgmr.msra.gmra.mxu1 %vm65_vm0, %v31_v21 }
  0x1d   :  { %144 = vmatmul.msk.f32.vlgmr.msra.gmra.mxu3 %vm65_vm0, %v32_v22  ;;  %57 = vperm.xlu0 %170, %v53_v23  }
  0x25   :  { %62 = vperm.xlu0 %170, %v54_v24  }
  0x8f   :  { %v58_v25 = vpop.permute.xlu0 %57 }
  0x97   :  { %v63_v30 = vpop.permute.xlu0 %62 }
  0x98   :  { %v89_v26 = vpop.f32.mrf.mxu0 }
  0x99   :  { %v90_v27 = vadd.f32 %v89_v26, %v58_v25  ;;  %v112_v28 = vpop.f32.mrf.mxu1 }
  0x9a   :  { %v113_v29 = vadd.f32 %v112_v28, %v58_v25 }
  0x9b   :  { %118 = vst [vmem:[#allocation5] sm:$0xff] %v90_v27 }
  0x9c   :  { %119 = vst [vmem:[#allocation5 + $0x8] sm:$0xff] %v113_v29 }
  0x9f   :  { %v92_v31 = vpop.f32.mrf.mxu2 }
  0xa0   :  { %v93_v32 = vadd.f32 %v92_v31, %v63_v30  ;;  %v115_v33 = vpop.f32.mrf.mxu3 }
  0xa1   :  { %v116_v34 = vadd.f32 %v115_v33, %v63_v30 }
  0xa2   :  { %120 = vst [vmem:[#allocation5 + $0x10] sm:$0xff] %v93_v32 }
  0xa3   :  { %121 = vst [vmem:[#allocation5 + $0x18] sm:$0xff] %v116_v34 }
  0xa4   :  { %134 = dma.vmem_to_hbm [thread:$0]  %s127_s26, 512, %s129_s29, [#allocation4], %s224_s17, %s224_s17, %s225_s18  }
  0xa5   :  { %221 = dma.done.wait [#allocation4], 512  }
  0xa6   :  { %222 = vsyncadd [#allocation4], 4294966784 }
  0xa7   :  { %139 = vsyncpa [#allocation3], 1 }
  0xa8   :  { %140 = vsyncpa [#allocation4], 1 }

</bundles_post_ra>
